<compile_context>
chip_gen: v7x
topology: tpu7x:2x2x1
jax: 0.10.0
libtpu: 0.0.40
codegen_flags: <defaults>
</compile_context>

<pallas_src>
import functools

import jax
import jax.numpy as jnp
import numpy as np
from jax.experimental import pallas as pl
from jax.experimental.pallas import tpu as pltpu


def _round_up(x, m):
    return (x + m - 1) // m * m


def _split_loss_kernel(*refs, s):
    """Per-(batch, pixel-tile) body.

    refs = (x_ref, t_ref, [c_ref,] out_ref, acc1[, acc2])
      x_ref, t_ref, c_ref : (C, TN) VMEM blocks of one batch element
      out_ref             : (2, 128) VMEM block -> rows broadcast with
                            [sum_sq, sum_weighted_tail]
      acc1, acc2          : (C, TN) f32 VMEM scratch accumulators
    """
    if s > 0:
        x_ref, t_ref, c_ref, out_ref, acc1, acc2 = refs
    else:
        x_ref, t_ref, out_ref, acc1 = refs
        acc2 = None

    tile = pl.program_id(1)
    last = pl.num_programs(1) - 1

    @pl.when(tile == 0)
    def _():
        acc1[...] = jnp.zeros_like(acc1)
        if s > 0:
            acc2[...] = jnp.zeros_like(acc2)

    x = x_ref[...].astype(jnp.float32)            # (C, TN)
    t = t_ref[...].astype(jnp.float32)
    d = x - t                                     # per-channel residual
    # d_prev[i] = d[i-1]; row 0 forced to 0 so term_0 = d[0]**2.
    d_shift = pltpu.roll(d, shift=1, axis=0)      # sublane rotate (XLU, cheap)
    row = jax.lax.broadcasted_iota(jnp.int32, d.shape, 0)
    d_prev = jnp.where(row == 0, 0.0, d_shift)
    dd = d - d_prev
    sq = dd * dd                                  # term_i per pixel

    acc1[...] += sq                               # pure VALU accumulation

    if s > 0:
        c = c_ref[...].astype(jnp.float32)
        # Row mask instead of an unaligned sublane slice (avoids layout copies).
        acc2[...] += jnp.where(row >= s, c, 0.0) * sq

    @pl.when(tile == last)
    def _():
        s1 = jnp.sum(acc1[...])
        s2 = jnp.sum(acc2[...]) if s > 0 else jnp.float32(0.0)
        out_row = jax.lax.broadcasted_iota(jnp.int32, (2, 128), 0)
        out_ref[...] = jnp.where(out_row == 0, s1, s2)   # lane-dense full store


def custom_split_loss(x, target, constants=None, *, loss_weight, loss2_weight,
                      num, max_block_bytes=1 << 20):
    """x, target, constants: (B, C, H, W) arrays.  Returns scalar f32 loss."""
    B, C, H, W = x.shape
    HW = H * W
    N = B * HW
    s = C - 1 - num                               # static Python int

    # Pixel-tile width: lane-dense multiple of 128, ~max_block_bytes per block.
    lanes = max(128, (max_block_bytes // (4 * C)) // 128 * 128)
    TN = min(lanes, _round_up(HW, 128))
    T = pl.cdiv(HW, TN)
    HWp = T * TN

    def prep(a):
        a = a.reshape(B, C, HW)                   # free reshape, layout kept
        if HWp != HW:
            # Zero padding is exact: padded pixels contribute 0 to both sums.
            a = jnp.pad(a, ((0, 0), (0, 0), (0, HWp - HW)))
        return a

    blk = pl.BlockSpec((pl.Squeezed(), C, TN), lambda b, t: (b, 0, t))
    operands = [prep(x), prep(target)]
    in_specs = [blk, blk]
    scratch = [pltpu.VMEM((C, TN), jnp.float32)]
    if s > 0:
        operands.append(prep(constants))
        in_specs.append(blk)
        scratch.append(pltpu.VMEM((C, TN), jnp.float32))

    kernel = functools.partial(_split_loss_kernel, s=s)

    partials = pl.pallas_call(
        kernel,
        out_shape=jax.ShapeDtypeStruct((B, 2, 128), jnp.float32),
        grid_spec=pltpu.PrefetchScalarGridSpec(
            num_scalar_prefetch=0,
            grid=(B, T),
            in_specs=in_specs,
            out_specs=pl.BlockSpec((pl.Squeezed(), 2, 128),
                                   lambda b, t: (b, 0, 0)),
            scratch_shapes=scratch),
        compiler_params=pltpu.CompilerParams(
            dimension_semantics=("parallel", "arbitrary")),
    )(*operands)

    sums = partials[:, :, 0]                       # (B, 2) per-batch partials
    loss = jnp.sum(sums[:, 0]) / jnp.float32(C * N)
    if s > 0:
        # NOTE: divides by `num` although num+1 channel terms are summed —
        # this matches the PyTorch module exactly (intentional quirk).
        loss2 = jnp.sum(sums[:, 1]) / jnp.float32(num * N)
        loss = loss * jnp.float32(loss_weight) + loss2 * jnp.float32(loss2_weight)
    return loss


def _reference(x, t, c, loss_weight, loss2_weight, num):
    """Pure-JAX reference mirroring the PyTorch loop."""
    C = x.shape[1]
    loss = None
    loss2 = None
    for i in range(C):
        if i >= C - 1 - num and C - 1 - num > 0:
            term2 = c[:, i] * (x[:, i] - x[:, i - 1] - t[:, i] + t[:, i - 1]) ** 2
            loss2 = term2 if i == C - 1 - num else loss2 + term2
        if i == 0:
            loss = (x[:, i] - t[:, i]) ** 2
        else:
            loss = loss + (x[:, i] - x[:, i - 1] - t[:, i] + t[:, i - 1]) ** 2
    loss = jnp.mean(loss / C)
    if C - 1 - num > 0:
        loss2 = jnp.mean(loss2 / num)
        loss = loss * loss_weight + loss2 * loss2_weight
    return loss


if __name__ == "__main__":
    # "Parameters" of the module (deterministic, in-script).
    loss_weight = 1.0
    loss2_weight = 0.5

    B, C, H, W = 2, 8, 16, 16
    key = jax.random.PRNGKey(0)
    kx, kt, kc = jax.random.split(key, 3)
    x = jax.random.normal(kx, (B, C, H, W), dtype=jnp.float32)
    t = jax.random.normal(kt, (B, C, H, W), dtype=jnp.float32)
    constants = jax.random.uniform(kc, (B, C, H, W), dtype=jnp.float32)

    # Case 1: num=3 -> C-1-num = 4 > 0, both loss branches exercised.
    num = 3
    out = custom_split_loss(x, t, constants,
                            loss_weight=loss_weight,
                            loss2_weight=loss2_weight,
                            num=num)
    out = jax.block_until_ready(out)
    ref = _reference(x, t, constants, loss_weight, loss2_weight, num)
    np.testing.assert_allclose(np.asarray(out), np.asarray(ref),
                               rtol=1e-5, atol=1e-5)

    # Case 2: num=10 -> C-1-num <= 0, only the plain loss branch (no constants).
    num = 10
    out2 = custom_split_loss(x, t, None,
                             loss_weight=loss_weight,
                             loss2_weight=loss2_weight,
                             num=num)
    out2 = jax.block_until_ready(out2)
    ref2 = _reference(x, t, None, loss_weight, loss2_weight, num)
    np.testing.assert_allclose(np.asarray(out2), np.asarray(ref2),
                               rtol=1e-5, atol=1e-5)

    print("KERNEL_OK")
</pallas_src>

<mosaic_0001>
module attributes {stable_mosaic.version = 11 : i64} {
  func.func @_split_loss_kernel(%arg0: i32, %arg1: i32, %arg2: memref<1x8x256xf32, #tpu.memory_space<vmem>>, %arg3: memref<1x8x256xf32, #tpu.memory_space<vmem>>, %arg4: memref<1x8x256xf32, #tpu.memory_space<vmem>>, %arg5: memref<1x2x128xf32, #tpu.memory_space<vmem>>, %arg6: memref<8x256xf32, #tpu.memory_space<vmem>>, %arg7: memref<8x256xf32, #tpu.memory_space<vmem>>) attributes {dimension_semantics = [#tpu.dimension_semantics<parallel>, #tpu.dimension_semantics<arbitrary>], iteration_bounds = array<i64: 2, 1>, scalar_prefetch = 0 : i64, scratch_operands = 2 : i64, tpu.core_type = #tpu.core_type<tc>, window_params = [{transform_indices = @transform_0, window_bounds = array<i64: 1, 8, 256>}, {transform_indices = @transform_1, window_bounds = array<i64: 1, 8, 256>}, {transform_indices = @transform_2, window_bounds = array<i64: 1, 8, 256>}, {transform_indices = @transform_3, window_bounds = array<i64: 1, 2, 128>}]} {
    %c0_i32 = arith.constant 0 : i32
    %0 = arith.cmpi eq, %arg1, %c0_i32 : i32
    %1 = arith.extui %0 : i1 to i32
    %c0_i32_0 = arith.constant 0 : i32
    %2 = arith.cmpi ne, %1, %c0_i32_0 : i32
    scf.if %2 {
      %cst_21 = arith.constant 0.000000e+00 : f32
      %32 = vector.broadcast %cst_21 : f32 to vector<8x256xf32>
      %c0_22 = arith.constant 0 : index
      %c0_23 = arith.constant 0 : index
      %33 = vector.load %arg6[%c0_22, %c0_23] : memref<8x256xf32, #tpu.memory_space<vmem>>, vector<8x256xf32>
      tpu.vector_store %arg6[%c0_22, %c0_23], %32 {strides = array<i32>} : memref<8x256xf32, #tpu.memory_space<vmem>>, vector<8x256xf32>,
      %cst_24 = arith.constant 0.000000e+00 : f32
      %34 = vector.broadcast %cst_24 : f32 to vector<8x256xf32>
      %c0_25 = arith.constant 0 : index
      %c0_26 = arith.constant 0 : index
      %35 = vector.load %arg7[%c0_25, %c0_26] : memref<8x256xf32, #tpu.memory_space<vmem>>, vector<8x256xf32>
      tpu.vector_store %arg7[%c0_25, %c0_26], %34 {strides = array<i32>} : memref<8x256xf32, #tpu.memory_space<vmem>>, vector<8x256xf32>,
    } else {
    }
    %c0 = arith.constant 0 : index
    %c0_1 = arith.constant 0 : index
    %c0_2 = arith.constant 0 : index
    %3 = vector.load %arg2[%c0, %c0_1, %c0_2] : memref<1x8x256xf32, #tpu.memory_space<vmem>>, vector<1x8x256xf32>
    %4 = vector.shape_cast %3 : vector<1x8x256xf32> to vector<8x256xf32>
    %c0_3 = arith.constant 0 : index
    %c0_4 = arith.constant 0 : index
    %c0_5 = arith.constant 0 : index
    %5 = vector.load %arg3[%c0_3, %c0_4, %c0_5] : memref<1x8x256xf32, #tpu.memory_space<vmem>>, vector<1x8x256xf32>
    %6 = vector.shape_cast %5 : vector<1x8x256xf32> to vector<8x256xf32>
    %7 = arith.subf %4, %6 : vector<8x256xf32>
    %c1_i32 = arith.constant 1 : i32
    %8 = tpu.dynamic_rotate %7 by %c1_i32 dim 0 : vector<8x256xf32>, i32 -> vector<8x256xf32>
    %9 = tpu.iota {dimensions = array<i32: 0>} : vector<8x256xi32>
    %c0_i32_6 = arith.constant 0 : i32
    %10 = vector.broadcast %c0_i32_6 : i32 to vector<8x256xi32>
    %11 = arith.cmpi eq, %9, %10 : vector<8x256xi32>
    %cst = arith.constant 0.000000e+00 : f32
    %12 = vector.broadcast %cst : f32 to vector<8x256xf32>
    %13 = arith.select %11, %12, %8 : vector<8x256xi1>, vector<8x256xf32>
    %14 = arith.subf %7, %13 : vector<8x256xf32>
    %15 = arith.mulf %14, %14 : vector<8x256xf32>
    %c0_7 = arith.constant 0 : index
    %c0_8 = arith.constant 0 : index
    %16 = vector.load %arg6[%c0_7, %c0_8] : memref<8x256xf32, #tpu.memory_space<vmem>>, vector<8x256xf32>
    %17 = arith.addf %16, %15 : vector<8x256xf32>
    %c0_9 = arith.constant 0 : index
    %c0_10 = arith.constant 0 : index
    %18 = vector.load %arg6[%c0_9, %c0_10] : memref<8x256xf32, #tpu.memory_space<vmem>>, vector<8x256xf32>
    tpu.vector_store %arg6[%c0_9, %c0_10], %17 {strides = array<i32>} : memref<8x256xf32, #tpu.memory_space<vmem>>, vector<8x256xf32>,
    %c0_11 = arith.constant 0 : index
    %c0_12 = arith.constant 0 : index
    %c0_13 = arith.constant 0 : index
    %19 = vector.load %arg4[%c0_11, %c0_12, %c0_13] : memref<1x8x256xf32, #tpu.memory_space<vmem>>, vector<1x8x256xf32>
    %20 = vector.shape_cast %19 : vector<1x8x256xf32> to vector<8x256xf32>
    %c0_14 = arith.constant 0 : index
    %c0_15 = arith.constant 0 : index
    %21 = vector.load %arg7[%c0_14, %c0_15] : memref<8x256xf32, #tpu.memory_space<vmem>>, vector<8x256xf32>
    %c4_i32 = arith.constant 4 : i32
    %22 = vector.broadcast %c4_i32 : i32 to vector<8x256xi32>
    %23 = arith.cmpi sge, %9, %22 : vector<8x256xi32>
    %cst_16 = arith.constant 0.000000e+00 : f32
    %24 = vector.broadcast %cst_16 : f32 to vector<8x256xf32>
    %25 = arith.select %23, %20, %24 : vector<8x256xi1>, vector<8x256xf32>
    %26 = arith.mulf %25, %15 : vector<8x256xf32>
    %27 = arith.addf %21, %26 : vector<8x256xf32>
    %c0_17 = arith.constant 0 : index
    %c0_18 = arith.constant 0 : index
    %28 = vector.load %arg7[%c0_17, %c0_18] : memref<8x256xf32, #tpu.memory_space<vmem>>, vector<8x256xf32>
    tpu.vector_store %arg7[%c0_17, %c0_18], %27 {strides = array<i32>} : memref<8x256xf32, #tpu.memory_space<vmem>>, vector<8x256xf32>,
    %c0_i32_19 = arith.constant 0 : i32
    %29 = arith.cmpi eq, %arg1, %c0_i32_19 : i32
    %30 = arith.extui %29 : i1 to i32
    %c0_i32_20 = arith.constant 0 : i32
    %31 = arith.cmpi ne, %30, %c0_i32_20 : i32
    scf.if %31 {
      %c0_21 = arith.constant 0 : index
      %c0_22 = arith.constant 0 : index
      %32 = vector.load %arg6[%c0_21, %c0_22] : memref<8x256xf32, #tpu.memory_space<vmem>>, vector<8x256xf32>
      %33 = vector.shape_cast %32 : vector<8x256xf32> to vector<1x8x256xf32>
      %cst_23 = arith.constant dense<0.000000e+00> : vector<1xf32>
      %34 = vector.multi_reduction <add>, %33, %cst_23 [1, 2] : vector<1x8x256xf32> to vector<1xf32>
      %35 = vector.shape_cast %34 : vector<1xf32> to vector<1x1x1xf32>
      %36 = vector.extract %35[0, 0, 0] : f32 from vector<1x1x1xf32>
      %c0_24 = arith.constant 0 : index
      %c0_25 = arith.constant 0 : index
      %37 = vector.load %arg7[%c0_24, %c0_25] : memref<8x256xf32, #tpu.memory_space<vmem>>, vector<8x256xf32>
      %38 = vector.shape_cast %37 : vector<8x256xf32> to vector<1x8x256xf32>
      %cst_26 = arith.constant dense<0.000000e+00> : vector<1xf32>
      %39 = vector.multi_reduction <add>, %38, %cst_26 [1, 2] : vector<1x8x256xf32> to vector<1xf32>
      %40 = vector.shape_cast %39 : vector<1xf32> to vector<1x1x1xf32>
      %41 = vector.extract %40[0, 0, 0] : f32 from vector<1x1x1xf32>
      %42 = tpu.iota {dimensions = array<i32: 0>} : vector<2x128xi32>
      %c0_i32_27 = arith.constant 0 : i32
      %43 = vector.broadcast %c0_i32_27 : i32 to vector<2x128xi32>
      %44 = arith.cmpi eq, %42, %43 : vector<2x128xi32>
      %45 = vector.broadcast %36 : f32 to vector<2x128xf32>
      %46 = vector.broadcast %41 : f32 to vector<2x128xf32>
      %47 = arith.select %44, %45, %46 : vector<2x128xi1>, vector<2x128xf32>
      %c0_28 = arith.constant 0 : index
      %c0_29 = arith.constant 0 : index
      %c0_30 = arith.constant 0 : index
      %48 = vector.load %arg5[%c0_28, %c0_29, %c0_30] : memref<1x2x128xf32, #tpu.memory_space<vmem>>, vector<1x2x128xf32>
      %49 = vector.shape_cast %48 : vector<1x2x128xf32> to vector<2x128xf32>
      %50 = vector.shape_cast %47 : vector<2x128xf32> to vector<1x2x128xf32>
      tpu.vector_store %arg5[%c0_28, %c0_29, %c0_30], %50 {strides = array<i32>} : memref<1x2x128xf32, #tpu.memory_space<vmem>>, vector<1x2x128xf32>,
    } else {
    }
    return
  }
  func.func @transform_0(%arg0: i32, %arg1: i32) -> (i32, i32, i32) {
    %c0_i32 = arith.constant 0 : i32
    %c0_i32_0 = arith.constant 0 : i32
    return %arg0, %c0_i32, %arg1 : i32, i32, i32
  }
  func.func @transform_1(%arg0: i32, %arg1: i32) -> (i32, i32, i32) {
    %c0_i32 = arith.constant 0 : i32
    %c0_i32_0 = arith.constant 0 : i32
    return %arg0, %c0_i32, %arg1 : i32, i32, i32
  }
  func.func @transform_2(%arg0: i32, %arg1: i32) -> (i32, i32, i32) {
    %c0_i32 = arith.constant 0 : i32
    %c0_i32_0 = arith.constant 0 : i32
    return %arg0, %c0_i32, %arg1 : i32, i32, i32
  }
  func.func @transform_3(%arg0: i32, %arg1: i32) -> (i32, i32, i32) {
    %c0_i32 = arith.constant 0 : i32
    %c0_i32_0 = arith.constant 0 : i32
    %c0_i32_1 = arith.constant 0 : i32
    return %arg0, %c0_i32, %c0_i32_0 : i32, i32, i32
  }
}

</mosaic_0001>

<bundles_post_ra>
// kernel: tpu_custom_call.1
= control target key start
LH: loop header
LB: loop body
LE: loop exit
PB: predicated region body
PF: predicated region fallthrough
CT: control target
= control target key end

     0   :  { %s1071_s0 = inlined_call_operand.hbm [shape: f32[2,8,256], index: 0, kind: input, shape index: {}]   ;;  %s1072_s1 = inlined_call_operand.hbm [shape: f32[2,8,256], index: 1, kind: input, shape index: {}]   ;;  %s1073_s2 = inlined_call_operand.hbm [shape: f32[2,8,256], index: 2, kind: input, shape index: {}]   ;;  %s1074_s3 = inlined_call_operand.hbm [shape: f32[2,2,128], index: 3, kind: output, shape index: {}]  }
   0x1   :  { %1080 = sst [smem:[#allocation17_spill]] %s1072_s1 }
   0x2   :  { %8 = vsyncpa [#allocation5], 0 }
   0x3   :  { %10 = vsyncpa [#allocation5 + $0x1], 0 }
   0x4   :  { %11 = vsyncpa [#allocation8], 0 }
   0x5   :  { %13 = vsyncpa [#allocation8 + $0x1], 0 }
   0x6   :  { %14 = vsyncpa [#allocation6], 0 }
   0x7   :  { %16 = vsyncpa [#allocation6 + $0x1], 0  ;;  %s809_s12 = smov 0   ;;  %s811_s13 = smov 0  }
   0x8   :  { %s813_s14 = smov 0   ;;  %s815_s15 = smov 0  }
   0x9   :  { %s817_s16 = smov 0   ;;  %s819_s17 = smov 0  }
   0xa LB: > { %1081 = sst [smem:[#allocation14_spill]] %s779_s16  ;;  %s840_s18 = sadd.s32 4294967295, %s783_s17   ;;  %s783_s17 = sphi %s819_s17, %s22_s17   ;;  %s779_s16 = sphi %s817_s16, %s1102_s16   ;;  %s775_s15 = sphi %s815_s15, %s1101_s15   ;;  %s771_s14 = sphi %s813_s14, %s1105_s14   ;;  %s767_s13 = sphi %s811_s13, %s1104_s13   ;;  %s763_s12 = sphi %s809_s12, %s1103_s12  }
   0xb   : > { %s507_s19 = sadd.s32 4294967294, %s783_s17   ;;  %s34_s20 = sadd.s32 1, %s779_s16 }
   0xc   : > { %s43_s21 = sadd.s32 1, %s771_s14  ;;  %p36_p0 = scmp.ge.s32.totalorder %s34_s20, 2 }
   0xd   : > { %p50_p1 = scmp.ne.s32.totalorder %s771_s14, %s767_s13  ;;  %p51_p2 = scmp.eq.s32.totalorder %s783_s17, 0 }
   0xe   : > { %p56_p3 = scmp.ne.s32.totalorder %s767_s13, %s763_s12  ;;  %s1107_s20 = smov (%p36_p0, %s34_s20), 0 }
   0xf   : > { %1082 = sst [smem:[#allocation15_spill]] %s1107_s20  ;;  %p852_p4 = por %p51_p2, %p50_p1 }
  0x10   : > { %p57_p5 = scmp.eq.s32.totalorder %s840_s18, 0  ;;  %s38_s23 = ssub.s32 %s779_s16, %s1107_s20 }
  0x11   : > { %p136_p6 = scmp.eq.s32.totalorder %s840_s18, 1  ;;  %p41_p7 = scmp.eq.s32.totalorder %s38_s23, 0 }
  0x12   : > { %p860_p8 = por %p57_p5, %p56_p3  ;;  %p142_p10 = scmp.eq.s32.totalorder %s507_s19, 1 }
  0x13   : > { %p864_p9 = por %p136_p6, %p50_p1  ;;  %p557_p13 = scmp.lt.s32.totalorder %s783_s17, 2 }
  0x14   : > { %s1084_s24 = scalar_select %p860_p8, 1, 0 }
  0x15   : > { %s1085_s25 = scalar_select %p864_p9, 1, 0 }
  0x16   : > { %s869_s26 = scalar_select %p41_p7, %s771_s14, %s43_s21  }
  0x17   : > { %p871_p11 = por %p142_p10, %p56_p3  ;;  %s162_s28 = sand.u32 1, %s771_s14  }
  0x18   : > { %1086 = sst [smem:[#allocation16_spill]] %s869_s26  ;;  %s880_s29 = sshll.u32 %s162_s28, 4 }
  0x19   : > { %s1087_s27 = scalar_select %p871_p11, 1, 0 }
  0x1a   : > { %s883_s30 = sshll.u32 %s779_s16, 8  ;;  %p887_p0 = pnand %p557_p13, %p852_p4 }
  0x1b   : > { %s183_s5 = sand.u32 1, %s783_s17   ;;  %s1089_s1 = sld [smem:[#allocation17_spill]] }
  0x1c   : > { %s1088_s4 = scalar_select %p887_p0, 1, 0 }
  0x1d   : > { %s187_s9 = scalar_lea.vmem [#allocation7], %s880_s29  ;;  %s903_s11 = scalar_lea.sflag [#allocation8], %s183_s5 }
  0x1e   : > { %s197_s10 = sshll.u32 %s187_s9, 4  ;;  %p909_p4 = pneg %p887_p0  ;;  %s900_s10 = int_to_ptr.vmem [resolvable:$true] %s197_s10 }
  0x21   : > { %s896_s8 = scalar_lea.hbm %s1089_s1, %s883_s30  ;;  %s612_s6 = scalar_lea.hbm %s1089_s1, 512 }
  0x22   : > { %s607_s19 = scalar_lea.hbm %s896_s8, 256  ;;  %p613_p7 = scmp.lt.u32.totalorder %s896_s8, %s1089_s1 }
  0x23   : > { %p608_p3 = scmp.ne.s32.totalorder %s896_s8, %s607_s19  ;;  %p614_p10 = scmp.lt.u32.totalorder %s612_s6, %s607_s19 }
  0x24   : > { %p616_p12 = scmp.lt.u32.totalorder %s607_s19, %s896_s8 }
  0x25   : > { %p610_p5 = pnand %p909_p4, %p608_p3  ;;  %p615_p13 = por %p614_p10, %p613_p7 }
  0x27   : > { %p611_p6 = pneg %p610_p5  ;;  %p617_p1 = por %p616_p12, %p615_p13 }
  0x29   : > { %p618_p2 = pnand %p617_p1, %p611_p6 }
  0x2b   : > { %621 = shalt.err (!%p618_p2)
}
  0x2c   : > { %s622_s5 = scalar_lea.vmem %s900_s10, 256  ;;  %s785_s22 = smov [#allocation7]  }
  0x2d   : > { %p623_p3 = scmp.ne.s32.totalorder %s900_s10, %s622_s5  ;;  %s627_s23 = sshll.u32 %s785_s22, 4  ;;  %s628_s23 = int_to_ptr.vmem [resolvable:$false] %s627_s23 }
  0x2e   : > { %s629_s7 = scalar_lea.vmem %s628_s23, 512  ;;  %p630_p9 = scmp.lt.s32.totalorder %s900_s10, %s628_s23 }
  0x2f   : > { %p625_p5 = pnand %p623_p3, %p909_p4  ;;  %p631_p8 = scmp.lt.s32.totalorder %s629_s7, %s622_s5 }
  0x31   : > { %p626_p11 = pneg %p625_p5  ;;  %p632_p7 = por %p631_p8, %p630_p9 }
  0x33   : > { %p633_p10 = pnand %p632_p7, %p626_p11 }
  0x35   : > { %636 = shalt.err (!%p633_p10)
}
  0x36   : > { %549 = dma.hbm_to_vmem [thread:$0]  (!%p887_p0), %s896_s8, 256, %s900_s10, %s903_s11  }
  0x37   : > { %p1091_p12 = scmp.lt.s32.totalorder %s783_s17, 3  ;;  %p1092_p1 = scmp.ge.s32.totalorder %s783_s17, 1 }
  0x38   : > { %s945_s5 = scalar_lea.hbm %s1071_s0, %s883_s30  ;;  %s166_s22 = scalar_lea.vmem [#allocation4], %s880_s29 }
  0x39   : > { %p937_p2 = pnand %p1092_p1, %p1091_p12  ;;  %s176_s23 = sshll.u32 %s166_s22, 4  ;;  %s948_s23 = int_to_ptr.vmem [resolvable:$true] %s176_s23 }
  0x3a   : > { %s954_s7 = scalar_lea.hbm %s1073_s2, %s883_s30  ;;  %s163_s1 = scalar_lea.sflag [#allocation5], %s162_s28 }
  0x3b   : > { %s1093_s19 = scalar_select %p937_p2, 1, 0 }
  0x3c   : > { %s637_s20 = scalar_lea.hbm %s945_s5, 256  ;;  %s642_s16 = scalar_lea.hbm %s1071_s0, 512 }
  0x3d   : > { %p638_p8 = scmp.ne.s32.totalorder %s945_s5, %s637_s20  ;;  %p643_p6 = scmp.lt.u32.totalorder %s945_s5, %s1071_s0 }
  0x3e   : > { %p644_p13 = scmp.lt.u32.totalorder %s642_s16, %s637_s20  ;;  %p646_p5 = scmp.lt.u32.totalorder %s637_s20, %s945_s5 }
  0x3f   : > { %p640_p9 = pnand %p638_p8, %p909_p4 }
  0x40   : > { %p645_p3 = por %p644_p13, %p643_p6 }
  0x41   : > { %p641_p11 = pneg %p640_p9 }
  0x42   : > { %p647_p7 = por %p646_p5, %p645_p3 }
  0x44   : > { %p648_p10 = pnand %p647_p7, %p641_p11 }
  0x46   : > { %651 = shalt.err (!%p648_p10)
}
  0x47   : > { %s652_s28 = scalar_lea.vmem %s948_s23, 256  ;;  %s786_s30 = smov [#allocation4]  }
  0x48   : > { %p653_p12 = scmp.ne.s32.totalorder %s948_s23, %s652_s28  ;;  %s657_s8 = sshll.u32 %s786_s30, 4  ;;  %s658_s8 = int_to_ptr.vmem [resolvable:$false] %s657_s8 }
  0x49   : > { %s659_s26 = scalar_lea.vmem %s658_s8, 512  ;;  %p660_p9 = scmp.lt.s32.totalorder %s948_s23, %s658_s8 }
  0x4a   : > { %p655_p1 = pnand %p653_p12, %p909_p4  ;;  %p661_p2 = scmp.lt.s32.totalorder %s659_s26, %s652_s28 }
  0x4c   : > { %p656_p8 = pneg %p655_p1  ;;  %p662_p6 = por %p661_p2, %p660_p9 }
  0x4e   : > { %p663_p13 = pnand %p662_p6, %p656_p8 }
  0x50   : > { %666 = shalt.err (!%p663_p13)
}
  0x51   : > { %546 = dma.hbm_to_vmem [thread:$0]  (!%p887_p0), %s945_s5, 256, %s948_s23, %s163_s1  }
  0x52   : > { %s208_s16 = scalar_lea.vmem [#allocation9], %s880_s29  ;;  %s667_s10 = scalar_lea.hbm %s954_s7, 256 }
  0x53   : > { %s218_s20 = sshll.u32 %s208_s16, 4  ;;  %p668_p11 = scmp.ne.s32.totalorder %s954_s7, %s667_s10  ;;  %s219_s20 = int_to_ptr.vmem [resolvable:$true] %s218_s20 }
  0x54   : > { %s672_s22 = scalar_lea.hbm %s1073_s2, 512  ;;  %p673_p5 = scmp.lt.u32.totalorder %s954_s7, %s1073_s2 }
  0x55   : > { %p670_p2 = pnand %p668_p11, %p909_p4  ;;  %p674_p7 = scmp.lt.u32.totalorder %s672_s22, %s667_s10 }
  0x56   : > { %p676_p12 = scmp.lt.u32.totalorder %s667_s10, %s954_s7 }
  0x57   : > { %p671_p3 = pneg %p670_p2  ;;  %p675_p10 = por %p674_p7, %p673_p5 }
  0x59   : > { %p677_p1 = por %p676_p12, %p675_p10 }
  0x5b   : > { %p678_p8 = pnand %p677_p1, %p671_p3 }
  0x5d   : > { %681 = shalt.err (!%p678_p8)
}
  0x5e   : > { %s682_s1 = scalar_lea.vmem %s219_s20, 256  ;;  %s787_s29 = smov [#allocation9]  }
  0x5f   : > { %p683_p9 = scmp.ne.s32.totalorder %s219_s20, %s682_s1  ;;  %s687_s5 = sshll.u32 %s787_s29, 4  ;;  %s688_s5 = int_to_ptr.vmem [resolvable:$false] %s687_s5 }
  0x60   : > { %s689_s23 = scalar_lea.vmem %s688_s5, 512  ;;  %p690_p11 = scmp.lt.s32.totalorder %s219_s20, %s688_s5 }
  0x61   : > { %p685_p6 = pnand %p683_p9, %p909_p4  ;;  %p691_p2 = scmp.lt.s32.totalorder %s689_s23, %s682_s1 }
  0x63   : > { %p686_p13 = pneg %p685_p6  ;;  %p692_p0 = por %p691_p2, %p690_p11 }
  0x65   : > { %p693_p5 = pnand %p692_p0, %p686_p13 }
  0x67   : > { %696 = shalt.err (!%p693_p5)
}
  0x68   : > { %p1094_p7 = scmp.ne.s32.totalorder %s1088_s4, 0  ;;  %p1095_p3 = scmp.ne.s32.totalorder %s1093_s19, 0 }
  0x69   : > { %s1001_s21 = sand.u32 (!%p1095_p3), 1, %s767_s13   ;;  %p1096_p4 = scmp.ne.s32.totalorder (!%p1095_p3), %s1084_s24, 0 }
  0x6a   : > { %552 = dma.hbm_to_vmem [thread:$0]  (!%p1094_p7), %s954_s7, 256, %s219_s20, %s903_s11  }
  0x6b   : > { %227 = sbr.rel (%p1095_p3) target bundleno = 355 (0x163), region = 32  ;;  %s520_s8 = sshll.u32 (!%p1095_p3), %s1001_s21, 4 }
  0x6c   : > { %s230_s26 = scalar_lea.sflag (!%p1095_p3), [#allocation5], %s1001_s21  ;;  %s233_s16 = scalar_lea.vmem (!%p1095_p3), [#allocation4], %s520_s8 }
  0x72   : > { %750 = dma.done.wait (%p1096_p4), %s230_s26, 256  }
  0x73   : > { %752 = vsyncadd (%p1096_p4), %s230_s26, 4294967040  ;;  %s238_s4 = sand.u32 1, %s840_s18   ;;  %s242_s19 = scalar_lea.vmem [#allocation7], %s520_s8 }
  0x74   : > { %s239_s11 = scalar_lea.sflag [#allocation8], %s238_s4 }
  0x75   : > { %754 = dma.done.wait (%p1096_p4), %s239_s11, 512  }
  0x76   : > { %756 = vsyncadd (%p1096_p4), %s239_s11, 4294966784  ;;  %v303_v0 = vlaneseq  ;;  %v295_v2 = vld [vmem:[%s233_s16] sm:$0xff]  ;;  %v296_v3 = vld [vmem:[%s233_s16 + $0x8] sm:$0xff]  ;;  %s251_s7 = scalar_lea.vmem [#allocation9], %s520_s8  ;;  %s523_s18 = sshll.u32 %s1001_s21, 1 }
  0x77   : > { %v297_v4 = vld [vmem:[%s242_s19] sm:$0xff]  ;;  %v298_v5 = vld [vmem:[%s242_s19 + $0x8] sm:$0xff]  ;;  %s525_s24 = sshll.u32 %s775_s15, 5  ;;  %s283_s10 = scalar_lea.vmem [#allocation10], %s523_s18 }
  0x78   : > { %v304_v1 = vshrl.u32 %v303_v0, 7  ;;  %v299_v6 = vsub.f32 %v295_v2, %v297_v4  ;;  %v300_v7 = vsub.f32 %v296_v3, %v298_v5  ;;  %v318_v10 = vld [vmem:[%s251_s7] sm:$0xff]  ;;  %v319_v12 = vld [vmem:[%s251_s7 + $0x8] sm:$0xff]  ;;  %s376_s6 = sshll.u32 %s283_s10, 4  ;;  %s1021_s30 = scalar_lea.hbm %s1074_s3, %s525_s24  ;;  %s1023_s6 = int_to_ptr.vmem [resolvable:$true] %s376_s6 }
  0x79   : > { %s363_s15 = scalar_lea.sflag [#allocation6], %s1001_s21  ;;  %s697_s1 = scalar_lea.vmem %s1023_s6, 32 }
  0x7a   : > { %vm305_vm0 = vcmp.eq.s32.totalorder %v304_v1, 0  ;;  %v301_v8 = vrot.slane %v299_v6, 7  ;;  %v302_v9 = vrot.slane %v300_v7, 7  ;;  %vm322_vm1 = vcmp.ge.s32.totalorder %v304_v1, 4  ;;  %p698_p0 = scmp.ne.s32.totalorder %s1023_s6, %s697_s1  ;;  %p1097_p10 = scmp.ne.s32.totalorder %s1085_s25, 0 }
  0x7b   : > { %v323_v16 = vsel %vm322_vm1, %v318_v10, 0.0  ;;  %v324_v18 = vsel %vm322_vm1, %v319_v12, 0.0  ;;  %s788_s29 = smov [#allocation10]  }
  0x7c   : > { %v306_v11 = vsel %vm305_vm0, 0.0, %v301_v8  ;;  %v307_v13 = vsel %vm305_vm0, 0.0, %v302_v9  ;;  %p699_p12 = pnand %p698_p0, %p1097_p10  ;;  %s701_s5 = sshll.u32 %s788_s29, 4  ;;  %s702_s5 = int_to_ptr.vmem [resolvable:$false] %s701_s5 }
  0x7d   : > { %v308_v14 = vsub.f32 %v299_v6, %v306_v11  ;;  %v309_v15 = vsub.f32 %v300_v7, %v307_v13  ;;  %s703_s23 = scalar_lea.vmem %s702_s5, 64  ;;  %p704_p8 = scmp.lt.s32.totalorder %s1023_s6, %s702_s5 }
  0x7e   : > { %p700_p1 = pneg %p699_p12  ;;  %p705_p9 = scmp.lt.s32.totalorder %s703_s23, %s697_s1 }
  0x7f   : > { %v310_v17 = vmul.f32 %v308_v14, %v308_v14  ;;  %v311_v19 = vmul.f32 %v309_v15, %v309_v15 }
  0x80   : > { %p706_p6 = por %p705_p9, %p704_p8 }
  0x81   : > { %v325_v20 = vmul.f32 %v323_v16, %v310_v17  ;;  %v336_v21 = vadd.f32 %v311_v19, %v310_v17  ;;  %v326_v22 = vmul.f32 %v324_v18, %v311_v19 }
  0x82   : > { %p707_p13 = pnand %p706_p6, %p700_p1 }
  0x83   : > { %337 = vadd.xlane.f32.xlu0 %v336_v21  ;;  %v348_v23 = vadd.f32 %v326_v22, %v325_v20 }
  0x87   : > { %349 = vadd.xlane.f32.xlu0 %v348_v23 }
 0x110   : > { %v338_v24 = vpop.xlane.xlu0 %337 }
 0x111   : > { %v339_v25 = vrot.slane %v338_v24, 4 }
 0x113   : > { %v340_v26 = vadd.f32 %v339_v25, %v338_v24 }
 0x114   : > { %v350_v27 = vpop.xlane.xlu0 %349 }
 0x115   : > { %v341_v28 = vrot.slane %v340_v26, 2  ;;  %v351_v29 = vrot.slane %v350_v27, 4 }
 0x117   : > { %v352_v30 = vadd.f32 %v351_v29, %v350_v27  ;;  %v342_v31 = vadd.f32 %v341_v28, %v340_v26 }
 0x119   : > { %v353_v32 = vrot.slane %v352_v30, 2  ;;  %v343_v33 = vrot.slane %v342_v31, 1 }
 0x11b   : > { %v354_v34 = vadd.f32 %v353_v32, %v352_v30  ;;  %v344_v35 = vadd.f32 %v343_v33, %v342_v31 }
 0x11d   : > { %531 = vpush %v344_v35  ;;  %v355_v36 = vrot.slane %v354_v34, 1 }
 0x11f   : > { %v356_v37 = vadd.f32 %v355_v36, %v354_v34 }
 0x121   : > { %533 = vpush %v356_v37 }
 0x14e   : > { %s532_s20 = spop %531 }
 0x14f   : > { %v358_v38 = vstv %s532_s20 }
 0x152   : > { %s534_s9 = spop %533 }
 0x153   : > { %v359_v39 = vstv %s534_s9 }
 0x154   : > { %v360_v40 = vsel %vm305_vm0, %v358_v38, %v359_v39 }
 0x155   : > { %361 = vst [vmem:[%s283_s10] sm:$0x3] %v360_v40 }
 0x156   : > { %710 = shalt.err (!%p707_p13)
}
 0x157   : > { %s711_s21 = scalar_lea.hbm %s1021_s30, 32  ;;  %s715_s16 = scalar_lea.hbm %s1074_s3, 64 }
 0x158   : > { %p712_p11 = scmp.ne.s32.totalorder %s1021_s30, %s711_s21  ;;  %p716_p7 = scmp.lt.u32.totalorder %s1021_s30, %s1074_s3 }
 0x159   : > { %p717_p3 = scmp.lt.u32.totalorder %s715_s16, %s711_s21  ;;  %p719_p0 = scmp.lt.u32.totalorder %s711_s21, %s1021_s30 }
 0x15a   : > { %p713_p2 = pnand %p712_p11, %p1097_p10 }
 0x15b   : > { %p718_p4 = por %p717_p3, %p716_p7 }
 0x15c   : > { %p714_p5 = pneg %p713_p2 }
 0x15d   : > { %p720_p12 = por %p719_p0, %p718_p4 }
 0x15f   : > { %p721_p1 = pnand %p720_p12, %p714_p5 }
 0x161   : > { %724 = shalt.err (!%p721_p1)
}
 0x162   : > { %541 = dma.vmem_to_hbm [thread:$0]  (%p1097_p10), %s1023_s6, 32, %s1021_s30, %s363_s15  }
 0x163 PF: > { %s388_s19 = sand.u32 1, %s763_s12   ;;  %p1098_p8 = scmp.ne.s32.totalorder %s1087_s27, 0 }
 0x164   : > { %p1099_p9 = scmp.ge.s32.totalorder %s783_s17, 2  ;;  %s389_s7 = scalar_lea.sflag [#allocation6], %s388_s19 }
 0x166   : > { %p554_p6 = pnand %p1099_p9, %p1098_p8 }
 0x168   : > { %758 = dma.done.wait (!%p554_p6), %s389_s7, 32  }
 0x169   : > { %760 = vsyncadd (!%p554_p6), %s389_s7, 4294967264  ;;  %s22_s17 = sadd.s32 1, %s783_s17   ;;  %s1100_s25 = sld [smem:[#allocation16_spill]] }
 0x16a   : > { %p19_p13 = scmp.ge.s32.totalorder %s22_s17, 4   ;;  %s1101_s15 = sld [smem:[#allocation14_spill]] }
 0x16b   : > { %s1102_s16 = sld [smem:[#allocation15_spill]]  ;;  %s1103_s12 = smov %s767_s13 }
 0x16c   : > { %s1104_s13 = smov %s771_s14  ;;  %21 = sbr.rel (!%p19_p13) target bundleno = 10 (0xa), region = 109 }
 0x16f   : > { %s1105_s14 = smov %s1100_s25 }
 0x173   :  { %394 = vsyncpa [#allocation5], 1 }
 0x174   :  { %396 = vsyncpa [#allocation5 + $0x1], 1 }
 0x175   :  { %397 = vsyncpa [#allocation8], 1 }
 0x176   :  { %399 = vsyncpa [#allocation8 + $0x1], 1 }
 0x177   :  { %400 = vsyncpa [#allocation6], 1 }
 0x178   :  { %402 = vsyncpa [#allocation6 + $0x1], 1 }

</bundles_post_ra>
